<compile_context>
chip_gen: v7x
topology: tpu7x:2x2x1
jax: 0.10.0
libtpu: 0.0.40
codegen_flags: <defaults>
</compile_context>

<pallas_src>
import functools
import math

import jax
import jax.numpy as jnp
from jax import lax
from jax.experimental import pallas as pl
from jax.experimental.pallas import tpu as pltpu


def _flash_attn_kernel(q_ref, k_ref, v_ref, o_ref,
                       qs_sc, m_sc, l_sc, acc_sc, *,
                       scale, tk, sk_valid, compute_dtype, exp_dtype):
    """One (batch, q-tile, k-tile) grid step of flash-style attention.

    Ref shapes (batch dim squeezed out by the BlockSpecs):
      q_ref: (tq, D)  k_ref: (tk, D)  v_ref: (tk, Dv)  o_ref: (tq, Dv)
      qs_sc: (tq, D) compute_dtype   m_sc/l_sc: (tq, 1) f32   acc_sc: (tq, Dv) f32
    """
    ki = pl.program_id(2)

    @pl.when(ki == 0)
    def _init():
        # Scale + cast q ONCE per q tile; reused from VMEM for every k-step.
        q32 = q_ref[...].astype(jnp.float32) * scale
        qs_sc[...] = q32.astype(compute_dtype)
        m_sc[...] = jnp.full_like(m_sc, -jnp.inf)
        l_sc[...] = jnp.zeros_like(l_sc)
        acc_sc[...] = jnp.zeros_like(acc_sc)

    q = qs_sc[...]
    k = k_ref[...].astype(compute_dtype)

    # scores tile = q @ k^T, contracted on the last axes of both operands so k
    # is consumed in its native layout (no XLU transpose). f32 MXU accumulate.
    s = lax.dot_general(
        q, k,
        dimension_numbers=(((1,), (1,)), ((), ())),
        preferred_element_type=jnp.float32,
    )  # (tq, tk)

    if sk_valid is not None:  # key axis was padded -> mask padded columns
        col = ki * tk + lax.broadcasted_iota(jnp.int32, s.shape, 1)
        s = jnp.where(col < sk_valid, s, -jnp.inf)

    # Online-softmax update of the running (max, denom, weighted-V) state.
    m_prev = m_sc[...]
    m_new = jnp.maximum(m_prev, jnp.max(s, axis=-1, keepdims=True))
    alpha = jnp.exp(m_prev - m_new)                 # rescale of old state (f32)
    p = jnp.exp((s - m_new).astype(exp_dtype))      # (tq, tk) unnormalized wts

    l_sc[...] = alpha * l_sc[...] + jnp.sum(p, axis=-1, keepdims=True,
                                            dtype=jnp.float32)
    acc_sc[...] = alpha * acc_sc[...] + jnp.dot(
        p.astype(compute_dtype), v_ref[...].astype(compute_dtype),
        preferred_element_type=jnp.float32)
    m_sc[...] = m_new

    @pl.when(ki == pl.num_programs(2) - 1)
    def _finalize():
        l = l_sc[...]
        inv = pl.reciprocal(l, approx=True)   # EUP slot (otherwise idle here)
        inv = inv * (2.0 - l * inv)           # one Newton step -> ~f32 accuracy
        o_ref[...] = (acc_sc[...] * inv).astype(o_ref.dtype)


def _round_up(x, m):
    return ((x + m - 1) // m) * m


def _sublane_multiple(dtype):
    """Sublane packing granularity for a dtype (8 f32 / 16 bf16 / 32 int8)."""
    itemsize = jnp.dtype(dtype).itemsize
    if itemsize >= 4:
        return 8
    if itemsize == 2:
        return 16
    return 32


def _default_exp_dtype(compute_dtype):
    """bf16 exp on generations with a bf16 EUP (v6e/v7x), f32 elsewhere."""
    if jnp.dtype(compute_dtype) != jnp.dtype(jnp.bfloat16):
        return jnp.float32
    try:
        kind = jax.devices()[0].device_kind.lower()
    except Exception:
        return jnp.float32
    if any(v in kind for v in ("v2", "v3", "v4", "v5")):
        return jnp.float32
    return jnp.bfloat16


def transformer_self_attention(queries, keys, values, dropout=0.0, *,
                               block_q=512, block_k=1024,
                               compute_dtype=jnp.bfloat16, exp_dtype=None,
                               kv_resident_bytes=4 << 20,
                               vmem_budget_bytes=20 << 20):
    """Pallas TPU implementation of TransformerSelfAttention.forward (eval mode).

    compute_dtype: MXU operand dtype (bf16 default; pass jnp.float32 for an
    exact f32 path).  The large default tiles are appropriate for all of
    v5e/v6e/v7x; the VMEM-budget check shrinks them automatically if needed.
    """
    del dropout  # identity in eval mode / p == 0 (TODO(synk): training dropout)
    B, Sq, D = queries.shape
    Bk, Sk, Dk = keys.shape
    Bv, Skv, Dv = values.shape
    assert B == Bk == Bv and D == Dk and Sk == Skv

    if exp_dtype is None:
        exp_dtype = _default_exp_dtype(compute_dtype)

    q_item = jnp.dtype(queries.dtype).itemsize
    k_item = jnp.dtype(keys.dtype).itemsize
    v_item = jnp.dtype(values.dtype).itemsize
    c_item = jnp.dtype(compute_dtype).itemsize

    m_q = _sublane_multiple(queries.dtype)
    m_k = max(_sublane_multiple(keys.dtype), _sublane_multiple(values.dtype))

    # --- tile selection -----------------------------------------------------
    tq = _round_up(min(block_q, Sq), m_q)

    kv_row_bytes = D * k_item + Dv * v_item
    if Sk * kv_row_bytes <= kv_resident_bytes:
        # Whole K/V of one batch element stays VMEM-resident: its block index
        # is then constant across (qi, ki), so Pallas DMAs it once per batch.
        tk = _round_up(Sk, m_k)
    else:
        tk = _round_up(min(block_k, Sk), m_k)

    def vmem_estimate(tq_, tk_):
        blocks = 2 * (tq_ * D * q_item + tk_ * D * k_item
                      + tk_ * Dv * v_item + tq_ * Dv * q_item)   # double-buffered
        scratch = tq_ * D * c_item + 2 * tq_ * 4 + tq_ * Dv * 4
        temps = 4 * tq_ * tk_ * 4          # s / p / mask temporaries (rough)
        return blocks + scratch + temps

    # Stay comfortably inside the default scoped-VMEM limit (v7x: 32 MiB).
    while vmem_estimate(tq, tk) > vmem_budget_bytes:
        if tk // 2 >= max(m_k, 128) and (tk // 2) % m_k == 0:
            tk //= 2
        elif tq // 2 >= max(m_q, 128) and (tq // 2) % m_q == 0:
            tq //= 2
        else:
            break

    Sq_p = _round_up(Sq, tq)
    Sk_p = _round_up(Sk, tk)

    # v7x has 2 TensorCores: guarantee >= 2 units of parallel grid work when it
    # costs nothing (K/V fully resident -> smaller q tile adds no HBM traffic).
    if B * (Sq_p // tq) < 2 and Sk_p // tk == 1:
        half = tq // 2
        if half >= m_q and half % m_q == 0:
            tq = half

    # --- padding for non-divisible sequence lengths --------------------------
    q_pad, k_pad = Sq_p - Sq, Sk_p - Sk
    if q_pad:
        queries = jnp.pad(queries, ((0, 0), (0, q_pad), (0, 0)))
    if k_pad:
        keys = jnp.pad(keys, ((0, 0), (0, k_pad), (0, 0)))
        values = jnp.pad(values, ((0, 0), (0, k_pad), (0, 0)))

    grid = (B, Sq_p // tq, Sk_p // tk)
    scale = 1.0 / math.sqrt(D)
    kernel = functools.partial(
        _flash_attn_kernel, scale=scale, tk=tk,
        sk_valid=(Sk if k_pad else None),
        compute_dtype=compute_dtype, exp_dtype=exp_dtype)

    n_q, n_k = grid[1], grid[2]
    kv_passes = 1 if n_k == 1 else n_q          # K/V re-streamed per q tile
    cost = pl.CostEstimate(
        flops=2 * B * Sq_p * Sk_p * (D + Dv),
        transcendentals=B * Sq_p * Sk_p,
        bytes_accessed=(B * Sq_p * D * q_item
                        + kv_passes * B * Sk_p * kv_row_bytes
                        + B * Sq_p * Dv * q_item),
    )

    out = pl.pallas_call(
        kernel,
        out_shape=jax.ShapeDtypeStruct((B, Sq_p, Dv), queries.dtype),
        grid_spec=pltpu.PrefetchScalarGridSpec(
            num_scalar_prefetch=0,
            grid=grid,
            in_specs=[
                # Leading batch dim squeezed (None) -> 2-D refs in the kernel.
                pl.BlockSpec((None, tq, D), lambda b, qi, ki: (b, qi, 0)),
                # k/v index_maps are qi-invariant; with a single ki block they
                # are constant over the whole (qi, ki) sweep -> DMA'd once/batch.
                pl.BlockSpec((None, tk, D), lambda b, qi, ki: (b, ki, 0)),
                pl.BlockSpec((None, tk, Dv), lambda b, qi, ki: (b, ki, 0)),
            ],
            # Same output block for every ki -> VMEM-resident across the
            # reduction axis; only written back at the last ki.
            out_specs=pl.BlockSpec((None, tq, Dv), lambda b, qi, ki: (b, qi, 0)),
            scratch_shapes=[
                pltpu.VMEM((tq, D), compute_dtype),  # scaled + cast q tile
                pltpu.VMEM((tq, 1), jnp.float32),    # running max
                pltpu.VMEM((tq, 1), jnp.float32),    # running denominator
                pltpu.VMEM((tq, Dv), jnp.float32),   # running weighted-V acc
            ],
        ),
        compiler_params=pltpu.CompilerParams(
            dimension_semantics=("parallel", "parallel", "arbitrary"),
        ),
        cost_estimate=cost,
    )(queries, keys, values)

    if q_pad:
        out = out[:, :Sq, :]
    return out


def _reference(queries, keys, values):
    d = queries.shape[-1]
    scores = jnp.matmul(queries, jnp.swapaxes(keys, -1, -2)) / math.sqrt(d)
    w = jax.nn.softmax(scores, axis=2)
    return jnp.matmul(w, values)


if __name__ == "__main__":
    # 1) Exact-path check (f32 compute) at the module's toy shapes.
    kq, kk, kv = jax.random.split(jax.random.PRNGKey(0), 3)
    B, Sq, Sk, D, Dv = 2, 8, 8, 32, 32
    queries = jax.random.normal(kq, (B, Sq, D), dtype=jnp.float32)
    keys = jax.random.normal(kk, (B, Sk, D), dtype=jnp.float32)
    values = jax.random.normal(kv, (B, Sk, Dv), dtype=jnp.float32)
    out = jax.block_until_ready(
        transformer_self_attention(queries, keys, values, dropout=0.0,
                                   compute_dtype=jnp.float32))
    ref = _reference(queries, keys, values)
    assert out.shape == (B, Sq, Dv)
    assert jnp.allclose(out, ref, atol=1e-4, rtol=1e-4), "mismatch (f32 path)"

    # 2) Default bf16-MXU path with a tiled online-softmax reduction
    #    (kv_resident_bytes=0 forces K/V streaming -> grid (2, 2, 2)).
    kq2, kk2, kv2 = jax.random.split(jax.random.PRNGKey(1), 3)
    B2, S2, D2 = 2, 256, 128
    q2 = jax.random.normal(kq2, (B2, S2, D2), dtype=jnp.float32)
    k2 = jax.random.normal(kk2, (B2, S2, D2), dtype=jnp.float32)
    v2 = jax.random.normal(kv2, (B2, S2, D2), dtype=jnp.float32)
    out2 = jax.block_until_ready(
        transformer_self_attention(q2, k2, v2, dropout=0.0,
                                   block_q=128, block_k=128,
                                   kv_resident_bytes=0))
    ref2 = _reference(q2, k2, v2)
    assert jnp.allclose(out2, ref2, atol=2e-2, rtol=2e-2), "mismatch (bf16 path)"

    # 3) Non-divisible key length -> pad-to-tile + in-kernel -inf masking,
    #    plus K/V residency across two q tiles (f32 compute, tight tolerance).
    kq3, kk3, kv3 = jax.random.split(jax.random.PRNGKey(2), 3)
    B3, Sq3, Sk3, D3 = 1, 64, 100, 64
    q3 = jax.random.normal(kq3, (B3, Sq3, D3), dtype=jnp.float32)
    k3 = jax.random.normal(kk3, (B3, Sk3, D3), dtype=jnp.float32)
    v3 = jax.random.normal(kv3, (B3, Sk3, D3), dtype=jnp.float32)
    out3 = jax.block_until_ready(
        transformer_self_attention(q3, k3, v3, dropout=0.0,
                                   compute_dtype=jnp.float32))
    ref3 = _reference(q3, k3, v3)
    assert jnp.allclose(out3, ref3, atol=1e-4, rtol=1e-4), "mismatch (masked path)"

    print("KERNEL_OK")
</pallas_src>

<mosaic_0001>
module attributes {stable_mosaic.version = 11 : i64} {
  func.func @_flash_attn_kernel(%arg0: i32, %arg1: i32, %arg2: i32, %arg3: memref<1x8x32xf32, #tpu.memory_space<vmem>>, %arg4: memref<1x8x32xf32, #tpu.memory_space<vmem>>, %arg5: memref<1x8x32xf32, #tpu.memory_space<vmem>>, %arg6: memref<1x8x32xf32, #tpu.memory_space<vmem>>, %arg7: memref<8x32xf32, #tpu.memory_space<vmem>>, %arg8: memref<8x1xf32, #tpu.memory_space<vmem>>, %arg9: memref<8x1xf32, #tpu.memory_space<vmem>>, %arg10: memref<8x32xf32, #tpu.memory_space<vmem>>) attributes {dimension_semantics = [#tpu.dimension_semantics<parallel>, #tpu.dimension_semantics<parallel>, #tpu.dimension_semantics<arbitrary>], iteration_bounds = array<i64: 2, 1, 1>, scalar_prefetch = 0 : i64, scratch_operands = 4 : i64, tpu.core_type = #tpu.core_type<tc>, window_params = [{transform_indices = @transform_0, window_bounds = array<i64: 1, 8, 32>}, {transform_indices = @transform_1, window_bounds = array<i64: 1, 8, 32>}, {transform_indices = @transform_2, window_bounds = array<i64: 1, 8, 32>}, {transform_indices = @transform_3, window_bounds = array<i64: 1, 8, 32>}]} {
    %c0_i32 = arith.constant 0 : i32
    %0 = arith.cmpi eq, %arg2, %c0_i32 : i32
    %1 = arith.extui %0 : i1 to i32
    %c0_i32_0 = arith.constant 0 : i32
    %2 = arith.cmpi ne, %1, %c0_i32_0 : i32
    scf.if %2 {
      %c0_25 = arith.constant 0 : index
      %c0_26 = arith.constant 0 : index
      %c0_27 = arith.constant 0 : index
      %34 = vector.load %arg3[%c0_25, %c0_26, %c0_27] : memref<1x8x32xf32, #tpu.memory_space<vmem>>, vector<1x8x32xf32>
      %35 = vector.shape_cast %34 : vector<1x8x32xf32> to vector<8x32xf32>
      %cst_28 = arith.constant 0.176776692 : f32
      %36 = vector.broadcast %cst_28 : f32 to vector<8x32xf32>
      %37 = arith.mulf %35, %36 : vector<8x32xf32>
      %c0_29 = arith.constant 0 : index
      %c0_30 = arith.constant 0 : index
      %38 = vector.load %arg7[%c0_29, %c0_30] : memref<8x32xf32, #tpu.memory_space<vmem>>, vector<8x32xf32>
      tpu.vector_store %arg7[%c0_29, %c0_30], %37 {strides = array<i32>} : memref<8x32xf32, #tpu.memory_space<vmem>>, vector<8x32xf32>,
      %cst_31 = arith.constant 0xFF800000 : f32
      %39 = vector.broadcast %cst_31 : f32 to vector<8x1xf32>
      %c0_32 = arith.constant 0 : index
      %c0_33 = arith.constant 0 : index
      %40 = vector.load %arg8[%c0_32, %c0_33] : memref<8x1xf32, #tpu.memory_space<vmem>>, vector<8x1xf32>
      tpu.vector_store %arg8[%c0_32, %c0_33], %39 {strides = array<i32>} : memref<8x1xf32, #tpu.memory_space<vmem>>, vector<8x1xf32>,
      %cst_34 = arith.constant 0.000000e+00 : f32
      %41 = vector.broadcast %cst_34 : f32 to vector<8x1xf32>
      %c0_35 = arith.constant 0 : index
      %c0_36 = arith.constant 0 : index
      %42 = vector.load %arg9[%c0_35, %c0_36] : memref<8x1xf32, #tpu.memory_space<vmem>>, vector<8x1xf32>
      tpu.vector_store %arg9[%c0_35, %c0_36], %41 {strides = array<i32>} : memref<8x1xf32, #tpu.memory_space<vmem>>, vector<8x1xf32>,
      %cst_37 = arith.constant 0.000000e+00 : f32
      %43 = vector.broadcast %cst_37 : f32 to vector<8x32xf32>
      %c0_38 = arith.constant 0 : index
      %c0_39 = arith.constant 0 : index
      %44 = vector.load %arg10[%c0_38, %c0_39] : memref<8x32xf32, #tpu.memory_space<vmem>>, vector<8x32xf32>
      tpu.vector_store %arg10[%c0_38, %c0_39], %43 {strides = array<i32>} : memref<8x32xf32, #tpu.memory_space<vmem>>, vector<8x32xf32>,
    } else {
    }
    %c0 = arith.constant 0 : index
    %c0_1 = arith.constant 0 : index
    %3 = vector.load %arg7[%c0, %c0_1] : memref<8x32xf32, #tpu.memory_space<vmem>>, vector<8x32xf32>
    %c0_2 = arith.constant 0 : index
    %c0_3 = arith.constant 0 : index
    %c0_4 = arith.constant 0 : index
    %4 = vector.load %arg4[%c0_2, %c0_3, %c0_4] : memref<1x8x32xf32, #tpu.memory_space<vmem>>, vector<1x8x32xf32>
    %5 = vector.shape_cast %4 : vector<1x8x32xf32> to vector<8x32xf32>
    %cst = arith.constant dense<0.000000e+00> : vector<8x8xf32>
    %6 = tpu.matmul %3, %5, %cst {dimension_numbers = #tpu.dot_dimension_numbers<[1], [1], [0], [0], [0, 0, 1, 0], [], []>} : vector<8x32xf32>, vector<8x32xf32>, vector<8x8xf32> -> vector<8x8xf32>
    %c0_5 = arith.constant 0 : index
    %c0_6 = arith.constant 0 : index
    %7 = vector.load %arg8[%c0_5, %c0_6] : memref<8x1xf32, #tpu.memory_space<vmem>>, vector<8x1xf32>
    %cst_7 = arith.constant dense<0xFF800000> : vector<8xf32>
    %8 = vector.multi_reduction <maximumf>, %6, %cst_7 [1] : vector<8x8xf32> to vector<8xf32>
    %9 = vector.shape_cast %8 : vector<8xf32> to vector<8x1xf32>
    %10 = arith.maximumf %7, %9 : vector<8x1xf32>
    %11 = arith.subf %7, %10 : vector<8x1xf32>
    %12 = math.exp %11 : vector<8x1xf32>
    %13 = vector.broadcast %10 : vector<8x1xf32> to vector<8x8xf32>
    %14 = arith.subf %6, %13 : vector<8x8xf32>
    %15 = math.exp %14 : vector<8x8xf32>
    %c0_8 = arith.constant 0 : index
    %c0_9 = arith.constant 0 : index
    %16 = vector.load %arg9[%c0_8, %c0_9] : memref<8x1xf32, #tpu.memory_space<vmem>>, vector<8x1xf32>
    %17 = arith.mulf %12, %16 : vector<8x1xf32>
    %cst_10 = arith.constant dense<0.000000e+00> : vector<8xf32>
    %18 = vector.multi_reduction <add>, %15, %cst_10 [1] : vector<8x8xf32> to vector<8xf32>
    %19 = vector.shape_cast %18 : vector<8xf32> to vector<8x1xf32>
    %20 = arith.addf %17, %19 : vector<8x1xf32>
    %c0_11 = arith.constant 0 : index
    %c0_12 = arith.constant 0 : index
    %21 = vector.load %arg9[%c0_11, %c0_12] : memref<8x1xf32, #tpu.memory_space<vmem>>, vector<8x1xf32>
    tpu.vector_store %arg9[%c0_11, %c0_12], %20 {strides = array<i32>} : memref<8x1xf32, #tpu.memory_space<vmem>>, vector<8x1xf32>,
    %c0_13 = arith.constant 0 : index
    %c0_14 = arith.constant 0 : index
    %22 = vector.load %arg10[%c0_13, %c0_14] : memref<8x32xf32, #tpu.memory_space<vmem>>, vector<8x32xf32>
    %23 = vector.broadcast %12 : vector<8x1xf32> to vector<8x32xf32>
    %24 = arith.mulf %23, %22 : vector<8x32xf32>
    %c0_15 = arith.constant 0 : index
    %c0_16 = arith.constant 0 : index
    %c0_17 = arith.constant 0 : index
    %25 = vector.load %arg5[%c0_15, %c0_16, %c0_17] : memref<1x8x32xf32, #tpu.memory_space<vmem>>, vector<1x8x32xf32>
    %26 = vector.shape_cast %25 : vector<1x8x32xf32> to vector<8x32xf32>
    %cst_18 = arith.constant dense<0.000000e+00> : vector<8x32xf32>
    %27 = tpu.matmul %15, %26, %cst_18 {dimension_numbers = #tpu.dot_dimension_numbers<[1], [0], [0], [1], [0, 0, 1, 1], [], []>} : vector<8x8xf32>, vector<8x32xf32>, vector<8x32xf32> -> vector<8x32xf32>
    %28 = arith.addf %24, %27 : vector<8x32xf32>
    %c0_19 = arith.constant 0 : index
    %c0_20 = arith.constant 0 : index
    %29 = vector.load %arg10[%c0_19, %c0_20] : memref<8x32xf32, #tpu.memory_space<vmem>>, vector<8x32xf32>
    tpu.vector_store %arg10[%c0_19, %c0_20], %28 {strides = array<i32>} : memref<8x32xf32, #tpu.memory_space<vmem>>, vector<8x32xf32>,
    %c0_21 = arith.constant 0 : index
    %c0_22 = arith.constant 0 : index
    %30 = vector.load %arg8[%c0_21, %c0_22] : memref<8x1xf32, #tpu.memory_space<vmem>>, vector<8x1xf32>
    tpu.vector_store %arg8[%c0_21, %c0_22], %10 {strides = array<i32>} : memref<8x1xf32, #tpu.memory_space<vmem>>, vector<8x1xf32>,
    %c0_i32_23 = arith.constant 0 : i32
    %31 = arith.cmpi eq, %arg2, %c0_i32_23 : i32
    %32 = arith.extui %31 : i1 to i32
    %c0_i32_24 = arith.constant 0 : i32
    %33 = arith.cmpi ne, %32, %c0_i32_24 : i32
    scf.if %33 {
      %c0_25 = arith.constant 0 : index
      %c0_26 = arith.constant 0 : index
      %34 = vector.load %arg9[%c0_25, %c0_26] : memref<8x1xf32, #tpu.memory_space<vmem>>, vector<8x1xf32>
      %35 = tpu.reciprocal %34 {approx = true} : vector<8x1xf32> -> vector<8x1xf32>
      %36 = arith.mulf %34, %35 : vector<8x1xf32>
      %cst_27 = arith.constant 2.000000e+00 : f32
      %37 = vector.broadcast %cst_27 : f32 to vector<8x1xf32>
      %38 = arith.subf %37, %36 : vector<8x1xf32>
      %39 = arith.mulf %35, %38 : vector<8x1xf32>
      %c0_28 = arith.constant 0 : index
      %c0_29 = arith.constant 0 : index
      %40 = vector.load %arg10[%c0_28, %c0_29] : memref<8x32xf32, #tpu.memory_space<vmem>>, vector<8x32xf32>
      %41 = vector.broadcast %39 : vector<8x1xf32> to vector<8x32xf32>
      %42 = arith.mulf %40, %41 : vector<8x32xf32>
      %c0_30 = arith.constant 0 : index
      %c0_31 = arith.constant 0 : index
      %c0_32 = arith.constant 0 : index
      %43 = vector.load %arg6[%c0_30, %c0_31, %c0_32] : memref<1x8x32xf32, #tpu.memory_space<vmem>>, vector<1x8x32xf32>
      %44 = vector.shape_cast %43 : vector<1x8x32xf32> to vector<8x32xf32>
      %45 = vector.shape_cast %42 : vector<8x32xf32> to vector<1x8x32xf32>
      tpu.vector_store %arg6[%c0_30, %c0_31, %c0_32], %45 {strides = array<i32>} : memref<1x8x32xf32, #tpu.memory_space<vmem>>, vector<1x8x32xf32>,
    } else {
    }
    return
  }
  func.func @transform_0(%arg0: i32, %arg1: i32, %arg2: i32) -> (i32, i32, i32) {
    %c0_i32 = arith.constant 0 : i32
    %c0_i32_0 = arith.constant 0 : i32
    return %arg0, %arg1, %c0_i32 : i32, i32, i32
  }
  func.func @transform_1(%arg0: i32, %arg1: i32, %arg2: i32) -> (i32, i32, i32) {
    %c0_i32 = arith.constant 0 : i32
    %c0_i32_0 = arith.constant 0 : i32
    return %arg0, %arg2, %c0_i32 : i32, i32, i32
  }
  func.func @transform_2(%arg0: i32, %arg1: i32, %arg2: i32) -> (i32, i32, i32) {
    %c0_i32 = arith.constant 0 : i32
    %c0_i32_0 = arith.constant 0 : i32
    return %arg0, %arg2, %c0_i32 : i32, i32, i32
  }
  func.func @transform_3(%arg0: i32, %arg1: i32, %arg2: i32) -> (i32, i32, i32) {
    %c0_i32 = arith.constant 0 : i32
    %c0_i32_0 = arith.constant 0 : i32
    return %arg0, %arg1, %c0_i32 : i32, i32, i32
  }
}

</mosaic_0001>

<bundles_post_ra>
// kernel: tpu_custom_call.1
= control target key start
LH: loop header
LB: loop body
LE: loop exit
PB: predicated region body
PF: predicated region fallthrough
CT: control target
= control target key end

     0   :  { %s1249_s0 = inlined_call_operand.hbm [shape: f32[2,8,32], index: 0, kind: input, shape index: {}]   ;;  %s1250_s1 = inlined_call_operand.hbm [shape: f32[2,8,32], index: 1, kind: input, shape index: {}]   ;;  %s1251_s2 = inlined_call_operand.hbm [shape: f32[2,8,32], index: 2, kind: input, shape index: {}]   ;;  %s1252_s3 = inlined_call_operand.hbm [shape: f32[2,8,32], index: 3, kind: output, shape index: {}]  }
   0x1   :  { %1258 = sst [smem:[#allocation19_spill]] %s1250_s1 }
   0x2   :  { %8 = vsyncpa [#allocation7], 0 }
   0x3   :  { %10 = vsyncpa [#allocation7 + $0x1], 0 }
   0x4   :  { %11 = vsyncpa [#allocation10], 0 }
   0x5   :  { %13 = vsyncpa [#allocation10 + $0x1], 0 }
   0x6   :  { %14 = vsyncpa [#allocation8], 0 }
   0x7   :  { %16 = vsyncpa [#allocation8 + $0x1], 0  ;;  %s972_s12 = smov 0   ;;  %s974_s13 = smov 0  }
   0x8   :  { %s976_s14 = smov 0   ;;  %s978_s15 = smov 0  }
   0x9   :  { %s980_s16 = smov 0   ;;  %s982_s17 = smov 0  }
   0xa LB: > { %1259 = sst [smem:[#allocation16_spill]] %s938_s16  ;;  %s1003_s18 = sadd.s32 4294967295, %s942_s17   ;;  %s942_s17 = sphi %s982_s17, %s22_s17   ;;  %s938_s16 = sphi %s980_s16, %s1280_s16   ;;  %s934_s15 = sphi %s978_s15, %s1279_s15   ;;  %s930_s14 = sphi %s976_s14, %s1283_s14   ;;  %s926_s13 = sphi %s974_s13, %s1282_s13   ;;  %s922_s12 = sphi %s972_s12, %s1281_s12  }
   0xb   : > { %s647_s19 = sadd.s32 4294967294, %s942_s17   ;;  %s41_s20 = sadd.s32 1, %s938_s16 }
   0xc   : > { %s50_s21 = sadd.s32 1, %s930_s14  ;;  %p43_p0 = scmp.ge.s32.totalorder %s41_s20, 2 }
   0xd   : > { %p57_p1 = scmp.ne.s32.totalorder %s930_s14, %s926_s13  ;;  %p58_p2 = scmp.eq.s32.totalorder %s942_s17, 0 }
   0xe   : > { %p63_p3 = scmp.ne.s32.totalorder %s926_s13, %s922_s12  ;;  %s1285_s20 = smov (%p43_p0, %s41_s20), 0 }
   0xf   : > { %1260 = sst [smem:[#allocation17_spill]] %s1285_s20  ;;  %p1015_p4 = por %p58_p2, %p57_p1 }
  0x10   : > { %p64_p5 = scmp.eq.s32.totalorder %s1003_s18, 0  ;;  %s45_s23 = ssub.s32 %s938_s16, %s1285_s20 }
  0x11   : > { %p145_p6 = scmp.eq.s32.totalorder %s1003_s18, 1  ;;  %p48_p7 = scmp.eq.s32.totalorder %s45_s23, 0 }
  0x12   : > { %p1023_p8 = por %p64_p5, %p63_p3  ;;  %p151_p10 = scmp.eq.s32.totalorder %s647_s19, 1 }
  0x13   : > { %p1027_p9 = por %p145_p6, %p57_p1  ;;  %p704_p13 = scmp.lt.s32.totalorder %s942_s17, 2 }
  0x14   : > { %s1262_s24 = scalar_select %p1023_p8, 1, 0 }
  0x15   : > { %s1263_s25 = scalar_select %p1027_p9, 1, 0 }
  0x16   : > { %s1032_s26 = scalar_select %p48_p7, %s930_s14, %s50_s21  }
  0x17   : > { %p1034_p11 = por %p151_p10, %p63_p3  ;;  %s171_s28 = sand.u32 1, %s930_s14  }
  0x18   : > { %1264 = sst [smem:[#allocation18_spill]] %s1032_s26  ;;  %s1043_s29 = sshll.u32 %s171_s28, 3 }
  0x19   : > { %s1265_s27 = scalar_select %p1034_p11, 1, 0 }
  0x1a   : > { %s1046_s30 = sshll.u32 %s938_s16, 7  ;;  %p1050_p0 = pnand %p704_p13, %p1015_p4 }
  0x1b   : > { %s190_s5 = sand.u32 1, %s942_s17   ;;  %s1267_s1 = sld [smem:[#allocation19_spill]] }
  0x1c   : > { %s1266_s4 = scalar_select %p1050_p0, 1, 0 }
  0x1d   : > { %s194_s9 = scalar_lea.vmem [#allocation9], %s1043_s29  ;;  %s1066_s11 = scalar_lea.sflag [#allocation10], %s190_s5 }
  0x1e   : > { %s202_s10 = sshll.u32 %s194_s9, 4  ;;  %p1072_p4 = pneg %p1050_p0  ;;  %s1063_s10 = int_to_ptr.vmem [resolvable:$true] %s202_s10 }
  0x21   : > { %s1059_s8 = scalar_lea.hbm %s1267_s1, %s1046_s30  ;;  %s771_s6 = scalar_lea.hbm %s1267_s1, 256 }
  0x22   : > { %s766_s19 = scalar_lea.hbm %s1059_s8, 128  ;;  %p772_p7 = scmp.lt.u32.totalorder %s1059_s8, %s1267_s1 }
  0x23   : > { %p767_p3 = scmp.ne.s32.totalorder %s1059_s8, %s766_s19  ;;  %p773_p10 = scmp.lt.u32.totalorder %s771_s6, %s766_s19 }
  0x24   : > { %p775_p12 = scmp.lt.u32.totalorder %s766_s19, %s1059_s8 }
  0x25   : > { %p769_p5 = pnand %p1072_p4, %p767_p3  ;;  %p774_p13 = por %p773_p10, %p772_p7 }
  0x27   : > { %p770_p6 = pneg %p769_p5  ;;  %p776_p1 = por %p775_p12, %p774_p13 }
  0x29   : > { %p777_p2 = pnand %p776_p1, %p770_p6 }
  0x2b   : > { %780 = shalt.err (!%p777_p2)
}
  0x2c   : > { %s781_s5 = scalar_lea.vmem %s1063_s10, 128  ;;  %s944_s22 = smov [#allocation9]  }
  0x2d   : > { %p782_p3 = scmp.ne.s32.totalorder %s1063_s10, %s781_s5  ;;  %s786_s23 = sshll.u32 %s944_s22, 4  ;;  %s787_s23 = int_to_ptr.vmem [resolvable:$false] %s786_s23 }
  0x2e   : > { %s788_s7 = scalar_lea.vmem %s787_s23, 256  ;;  %p789_p9 = scmp.lt.s32.totalorder %s1063_s10, %s787_s23 }
  0x2f   : > { %p784_p5 = pnand %p782_p3, %p1072_p4  ;;  %p790_p8 = scmp.lt.s32.totalorder %s788_s7, %s781_s5 }
  0x31   : > { %p785_p11 = pneg %p784_p5  ;;  %p791_p7 = por %p790_p8, %p789_p9 }
  0x33   : > { %p792_p10 = pnand %p791_p7, %p785_p11 }
  0x35   : > { %795 = shalt.err (!%p792_p10)
}
  0x36   : > { %696 = dma.hbm_to_vmem [thread:$0]  (!%p1050_p0), %s1059_s8, 128, %s1063_s10, %s1066_s11  }
  0x37   : > { %p1269_p12 = scmp.lt.s32.totalorder %s942_s17, 3  ;;  %p1270_p1 = scmp.ge.s32.totalorder %s942_s17, 1 }
  0x38   : > { %s1108_s5 = scalar_lea.hbm %s1249_s0, %s1046_s30  ;;  %s175_s22 = scalar_lea.vmem [#allocation6], %s1043_s29 }
  0x39   : > { %p1100_p2 = pnand %p1270_p1, %p1269_p12  ;;  %s183_s23 = sshll.u32 %s175_s22, 4  ;;  %s1111_s23 = int_to_ptr.vmem [resolvable:$true] %s183_s23 }
  0x3a   : > { %s1117_s7 = scalar_lea.hbm %s1251_s2, %s1046_s30  ;;  %s172_s1 = scalar_lea.sflag [#allocation7], %s171_s28 }
  0x3b   : > { %s1271_s19 = scalar_select %p1100_p2, 1, 0 }
  0x3c   : > { %s796_s20 = scalar_lea.hbm %s1108_s5, 128  ;;  %s801_s16 = scalar_lea.hbm %s1249_s0, 256 }
  0x3d   : > { %p797_p8 = scmp.ne.s32.totalorder %s1108_s5, %s796_s20  ;;  %p802_p6 = scmp.lt.u32.totalorder %s1108_s5, %s1249_s0 }
  0x3e   : > { %p803_p13 = scmp.lt.u32.totalorder %s801_s16, %s796_s20  ;;  %p805_p5 = scmp.lt.u32.totalorder %s796_s20, %s1108_s5 }
  0x3f   : > { %p799_p9 = pnand %p797_p8, %p1072_p4 }
  0x40   : > { %p804_p3 = por %p803_p13, %p802_p6 }
  0x41   : > { %p800_p11 = pneg %p799_p9 }
  0x42   : > { %p806_p7 = por %p805_p5, %p804_p3 }
  0x44   : > { %p807_p10 = pnand %p806_p7, %p800_p11 }
  0x46   : > { %810 = shalt.err (!%p807_p10)
}
  0x47   : > { %s811_s28 = scalar_lea.vmem %s1111_s23, 128  ;;  %s945_s30 = smov [#allocation6]  }
  0x48   : > { %p812_p12 = scmp.ne.s32.totalorder %s1111_s23, %s811_s28  ;;  %s816_s8 = sshll.u32 %s945_s30, 4  ;;  %s817_s8 = int_to_ptr.vmem [resolvable:$false] %s816_s8 }
  0x49   : > { %s818_s26 = scalar_lea.vmem %s817_s8, 256  ;;  %p819_p9 = scmp.lt.s32.totalorder %s1111_s23, %s817_s8 }
  0x4a   : > { %p814_p1 = pnand %p812_p12, %p1072_p4  ;;  %p820_p2 = scmp.lt.s32.totalorder %s818_s26, %s811_s28 }
  0x4c   : > { %p815_p8 = pneg %p814_p1  ;;  %p821_p6 = por %p820_p2, %p819_p9 }
  0x4e   : > { %p822_p13 = pnand %p821_p6, %p815_p8 }
  0x50   : > { %825 = shalt.err (!%p822_p13)
}
  0x51   : > { %693 = dma.hbm_to_vmem [thread:$0]  (!%p1050_p0), %s1108_s5, 128, %s1111_s23, %s172_s1  }
  0x52   : > { %s213_s16 = scalar_lea.vmem [#allocation11], %s1043_s29  ;;  %s826_s10 = scalar_lea.hbm %s1117_s7, 128 }
  0x53   : > { %s221_s20 = sshll.u32 %s213_s16, 4  ;;  %p827_p11 = scmp.ne.s32.totalorder %s1117_s7, %s826_s10  ;;  %s222_s20 = int_to_ptr.vmem [resolvable:$true] %s221_s20 }
  0x54   : > { %s831_s22 = scalar_lea.hbm %s1251_s2, 256  ;;  %p832_p5 = scmp.lt.u32.totalorder %s1117_s7, %s1251_s2 }
  0x55   : > { %p829_p2 = pnand %p827_p11, %p1072_p4  ;;  %p833_p7 = scmp.lt.u32.totalorder %s831_s22, %s826_s10 }
  0x56   : > { %p835_p12 = scmp.lt.u32.totalorder %s826_s10, %s1117_s7 }
  0x57   : > { %p830_p3 = pneg %p829_p2  ;;  %p834_p10 = por %p833_p7, %p832_p5 }
  0x59   : > { %p836_p1 = por %p835_p12, %p834_p10 }
  0x5b   : > { %p837_p8 = pnand %p836_p1, %p830_p3 }
  0x5d   : > { %840 = shalt.err (!%p837_p8)
}
  0x5e   : > { %s841_s1 = scalar_lea.vmem %s222_s20, 128  ;;  %s946_s29 = smov [#allocation11]  }
  0x5f   : > { %p842_p9 = scmp.ne.s32.totalorder %s222_s20, %s841_s1  ;;  %s846_s5 = sshll.u32 %s946_s29, 4  ;;  %s847_s5 = int_to_ptr.vmem [resolvable:$false] %s846_s5 }
  0x60   : > { %s848_s23 = scalar_lea.vmem %s847_s5, 256  ;;  %p849_p11 = scmp.lt.s32.totalorder %s222_s20, %s847_s5 }
  0x61   : > { %p844_p6 = pnand %p842_p9, %p1072_p4  ;;  %p850_p2 = scmp.lt.s32.totalorder %s848_s23, %s841_s1 }
  0x63   : > { %p845_p13 = pneg %p844_p6  ;;  %p851_p0 = por %p850_p2, %p849_p11 }
  0x65   : > { %p852_p5 = pnand %p851_p0, %p845_p13 }
  0x67   : > { %855 = shalt.err (!%p852_p5)
}
  0x68   : > { %p1272_p7 = scmp.ne.s32.totalorder %s1266_s4, 0  ;;  %p1273_p3 = scmp.ne.s32.totalorder %s1271_s19, 0 }
  0x69   : > { %s1164_s21 = sand.u32 (!%p1273_p3), 1, %s926_s13   ;;  %p1274_p0 = scmp.ne.s32.totalorder (!%p1273_p3), %s1262_s24, 0 }
  0x6a   : > { %699 = dma.hbm_to_vmem [thread:$0]  (!%p1272_p7), %s1117_s7, 128, %s222_s20, %s1066_s11  }
  0x6b   : > { %230 = sbr.rel (%p1273_p3) target bundleno = 943 (0x3af), region = 32  ;;  %s1167_s8 = sshll.u32 (!%p1273_p3), %s1164_s21, 3 }
  0x6c   : > { %s233_s26 = scalar_lea.sflag (!%p1273_p3), [#allocation7], %s1164_s21  ;;  %s236_s16 = scalar_lea.vmem (!%p1273_p3), [#allocation6], %s1167_s8 }
  0x72   : > { %909 = dma.done.wait (%p1274_p0), %s233_s26, 128  }
  0x73   : > { %911 = vsyncadd (%p1274_p0), %s233_s26, 4294967168  ;;  %s241_s4 = sand.u32 1, %s1003_s18   ;;  %s245_s19 = scalar_lea.vmem [#allocation9], %s1167_s8 }
  0x74   : > { %s242_s11 = scalar_lea.sflag [#allocation10], %s241_s4 }
  0x75   : > { %913 = dma.done.wait (%p1274_p0), %s242_s11, 256  }
  0x76   : > { %915 = vsyncadd (%p1274_p0), %s242_s11, 4294967040  ;;  %vm293_vm0 = vcmask 261120   ;;  %v947_v0 = vmov 0.0   ;;  %vm948_vm1 = vmmov 0   ;;  %v291_v1 = vld [vmem:[%s236_s16] sm:$0xff]  ;;  %v300_v2 = vld [vmem:[%s245_s19] sm:$0xff] }
  0x77   : > { %672 = vmatprep.subr.mxu0 %v947_v0  ;;  %298 = vst.msk [vmem:[#allocation5] sm:$0xff] %vm293_vm0, %v947_v0  ;;  %674 = vmatprep.mubr.msk.f32.mxu0 %vm948_vm1, %v947_v0  ;;  %v292_v3 = vmul.f32 0.17677669, %v291_v1  ;;  %vm295_vm2 = vcmask 7168   ;;  %v949_v5 = vmov -inf   ;;  %vm379_vm3 = vcmask 64512  }
  0x78   : > { %677 = vmatprep.subr.mxu1 %v947_v0  ;;  %679 = vmatprep.mubr.msk.f32.mxu1 %vm948_vm1, %v947_v0  ;;  %296 = vst.msk [vmem:[#allocation3] sm:$0xff] %vm295_vm2, %v949_v5  ;;  %297 = vst.msk [vmem:[#allocation4] sm:$0xff] %vm295_vm2, %v947_v0  ;;  %v950_v9 = vmov 0   ;;  %s254_s18 = scalar_lea.vmem [#allocation11], %s1167_s8  ;;  %s665_s24 = sshll.u32 %s934_s15, 7 }
  0x79   : > { %673 = vmatpush3.xpose.msk.msra.mxu0 %vm293_vm0, %v300_v2  ;;  %294 = vst.msk [vmem:[#allocation2] sm:$0xff] %vm293_vm0, %v292_v3  ;;  %758 = vset.pattern.permute.xlu0 %v950_v9  ;;  %v410_v14 = vld [vmem:[%s254_s18] sm:$0xff]  ;;  %s286_s7 = scalar_lea.vmem [#allocation12], %s1167_s8  ;;  %s1199_s9 = scalar_lea.hbm %s1252_s3, %s665_s24 }
  0x7a   : > { %759 = vset.pattern.permute.xlu1 %v950_v9  ;;  %678 = vmatpush3.msra.mxu1 %v410_v14  ;;  %s518_s20 = sshll.u32 %s286_s7, 4  ;;  %s504_s22 = scalar_lea.sflag [#allocation8], %s1164_s21  ;;  %s1201_s20 = int_to_ptr.vmem [resolvable:$true] %s518_s20 }
  0x7b   : > { %s856_s28 = scalar_lea.vmem %s1201_s20, 128  ;;  %p1275_p10 = scmp.ne.s32.totalorder %s1263_s25, 0 }
  0x7c   : > { %p857_p4 = scmp.ne.s32.totalorder %s1201_s20, %s856_s28  ;;  %s951_s15 = smov [#allocation12]  }
  0x7d   : > { %s860_s30 = sshll.u32 %s951_s15, 4  ;;  %s861_s30 = int_to_ptr.vmem [resolvable:$false] %s860_s30 }
  0x7e   : > { %v403_v31 = vld [vmem:[#allocation5] sm:$0xff]  ;;  %p858_p12 = pnand %p857_p4, %p1275_p10  ;;  %s862_s1 = scalar_lea.vmem %s861_s30, 256 }
  0x7f   : > { %v378_v10 = vld [vmem:[#allocation3] sm:$0xff]  ;;  %v395_v22 = vld [vmem:[#allocation4] sm:$0xff]  ;;  %p863_p8 = scmp.lt.s32.totalorder %s1201_s20, %s861_s30  ;;  %p864_p9 = scmp.lt.s32.totalorder %s862_s1, %s856_s28 }
  0x80   : > { %v299_v4 = vld [vmem:[#allocation2] sm:$0xff]  ;;  %p859_p1 = pneg %p858_p12 }
  0x81   : > { %675 = vmatmul.mubr.msk.f32.vlgmr.msra.gmra.mrb[0].mxu0 %vm293_vm0, %v299_v4  ;;  %p865_p6 = por %p864_p9, %p863_p8 }
  0x83   : > { %p866_p13 = pnand %p865_p6, %p859_p1 }
 0x154   : > { %v374_v6 = vpop.f32.mrb[0].mxu0 }
 0x155   : > { %v676_v7 = vpop.f32.mrb[1].mxu0  ;;  %v380_v8 = vsel %vm379_vm3, %v374_v6, -inf }
 0x156   : > { %381 = vmax.xlane.f32.xlu0 %v380_v8 }
 0x1e3   : > { %v382_v11 = vpop.xlane.xlu0 %381 }
 0x1e4   : > { %v383_v12 = vmax.f32 %v378_v10, %v382_v11 }
 0x1e6   : > { %v384_v13 = vsub.f32 %v378_v10, %v383_v12  ;;  %486 = vst.msk [vmem:[#allocation3] sm:$0xff] %vm295_vm2, %v383_v12  ;;  %389 = vperm.xlu0 %758, %v383_v12  }
 0x1e8   : > { %v385_v20 = vmul.f32 1.442695, %v384_v13 }
 0x265   : > { %v390_v15 = vpop.permute.xlu0 %389 }
 0x266   : > { %v392_v16 = vsub.f32 %v374_v6, %v390_v15 }
 0x268   : > { %v393_v17 = vmul.f32 1.442695, %v392_v16 }
 0x26a   : > { %760 = vpow2.f32 %v393_v17 }
 0x26b   : > { %762 = vpow2.f32 %v385_v20 }
 0x274   : > { %v761_v18 = vpop.eup %760 }
 0x275   : > { %680 = vmatmul.mubr.msk.f32.vlgmr.msra.gmra.mrb[0].mxu1 %vm379_vm3, %v761_v18  ;;  %v397_v19 = vsel %vm379_vm3, %v761_v18, 0.0  ;;  %v763_v21 = vpop.eup %762 }
 0x276   : > { %398 = vadd.xlane.f32.xlu1 %v397_v19  ;;  %v396_v23 = vmul.f32 %v763_v21, %v395_v22 }
 0x287   : > { %406 = vperm.xlu1 %759, %v763_v21  }
 0x303   : > { %v399_v24 = vpop.xlane.xlu1 %398 }
 0x304   : > { %v400_v25 = vadd.f32 %v399_v24, %v396_v23 }
 0x306   : > { %402 = vst.msk [vmem:[#allocation4] sm:$0xff] %vm295_vm2, %v400_v25 }
 0x307   : > { %v407_v32 = vpop.permute.xlu1 %406 }
 0x308   : > { %v409_v33 = vmul.f32 %v407_v32, %v403_v31 }
 0x30d   : > { %v490_v26 = vld [vmem:[#allocation4] sm:$0xff] }
 0x30e   : > { %764 = vrcp.f32 %v490_v26 }
 0x318   : > { %v765_v27 = vpop.eup %764 }
 0x319   : > { %v492_v28 = vmul.f32 %v765_v27, %v490_v26 }
 0x31b   : > { %v493_v29 = vsub.f32 2.0, %v492_v28 }
 0x31d   : > { %v494_v30 = vmul.f32 %v765_v27, %v493_v29 }
 0x31f   : > { %498 = vperm.xlu1 %759, %v494_v30  }
 0x348   : > { %v480_v34 = vpop.f32.mrb[0].mxu1 }
 0x349   : > { %v484_v35 = vadd.f32 %v480_v34, %v409_v33  ;;  %v681_v36 = vpop.f32.mrb[1].mxu1 }
 0x34b   : > { %485 = vst.msk [vmem:[#allocation5] sm:$0xff] %vm293_vm0, %v484_v35 }
 0x352   : > { %v495_v37 = vld [vmem:[#allocation5] sm:$0xff] }
 0x39e   : > { %v499_v38 = vpop.permute.xlu1 %498 }
 0x39f   : > { %v501_v39 = vmul.f32 %v499_v38, %v495_v37 }
 0x3a1   : > { %502 = vst.msk [vmem:[%s286_s7] sm:$0xff] %vm293_vm0, %v501_v39 }
 0x3a2   : > { %869 = shalt.err (!%p866_p13)
}
 0x3a3   : > { %s870_s29 = scalar_lea.hbm %s1199_s9, 128  ;;  %s874_s21 = scalar_lea.hbm %s1252_s3, 256 }
 0x3a4   : > { %p871_p11 = scmp.ne.s32.totalorder %s1199_s9, %s870_s29  ;;  %p875_p7 = scmp.lt.u32.totalorder %s1199_s9, %s1252_s3 }
 0x3a5   : > { %p876_p3 = scmp.lt.u32.totalorder %s874_s21, %s870_s29  ;;  %p878_p4 = scmp.lt.u32.totalorder %s870_s29, %s1199_s9 }
 0x3a6   : > { %p872_p2 = pnand %p871_p11, %p1275_p10 }
 0x3a7   : > { %p877_p0 = por %p876_p3, %p875_p7 }
 0x3a8   : > { %p873_p5 = pneg %p872_p2 }
 0x3a9   : > { %p879_p12 = por %p878_p4, %p877_p0 }
 0x3ab   : > { %p880_p1 = pnand %p879_p12, %p873_p5 }
 0x3ad   : > { %883 = shalt.err (!%p880_p1)
}
 0x3ae   : > { %688 = dma.vmem_to_hbm [thread:$0]  (%p1275_p10), %s1201_s20, 128, %s1199_s9, %s504_s22  }
 0x3af PF: > { %s530_s16 = sand.u32 1, %s922_s12   ;;  %p1276_p8 = scmp.ne.s32.totalorder %s1265_s27, 0 }
 0x3b0   : > { %p1277_p9 = scmp.ge.s32.totalorder %s942_s17, 2  ;;  %s531_s4 = scalar_lea.sflag [#allocation8], %s530_s16 }
 0x3b2   : > { %p701_p6 = pnand %p1277_p9, %p1276_p8 }
 0x3b4   : > { %917 = dma.done.wait (!%p701_p6), %s531_s4, 128  }
 0x3b5   : > { %919 = vsyncadd (!%p701_p6), %s531_s4, 4294967168  ;;  %s22_s17 = sadd.s32 1, %s942_s17   ;;  %s1278_s25 = sld [smem:[#allocation18_spill]] }
 0x3b6   : > { %p19_p13 = scmp.ge.s32.totalorder %s22_s17, 4   ;;  %s1279_s15 = sld [smem:[#allocation16_spill]] }
 0x3b7   : > { %s1280_s16 = sld [smem:[#allocation17_spill]]  ;;  %s1281_s12 = smov %s926_s13 }
 0x3b8   : > { %s1282_s13 = smov %s930_s14  ;;  %21 = sbr.rel (!%p19_p13) target bundleno = 10 (0xa), region = 109 }
 0x3bb   : > { %s1283_s14 = smov %s1278_s25 }
 0x3bf   :  { %536 = vsyncpa [#allocation7], 1 }
 0x3c0   :  { %538 = vsyncpa [#allocation7 + $0x1], 1 }
 0x3c1   :  { %539 = vsyncpa [#allocation10], 1 }
 0x3c2   :  { %541 = vsyncpa [#allocation10 + $0x1], 1 }
 0x3c3   :  { %542 = vsyncpa [#allocation8], 1 }
 0x3c4   :  { %544 = vsyncpa [#allocation8 + $0x1], 1 }

</bundles_post_ra>
